<compile_context>
chip_gen: v7x
topology: tpu7x:2x2x1
jax: 0.10.0
libtpu: 0.0.40
codegen_flags: <defaults>
</compile_context>

<pallas_src>
import jax
import jax.numpy as jnp
from jax import lax
from jax.experimental import pallas as pl
from jax.experimental.pallas import tpu as pltpu


# --------------------------------------------------------------------------- #
# Kernel 1a: per-segment representation  seg_repr = mean_S tanh(emb @ W_in)
#   No dependence on the memory state -> fully parallel grid over segments.
#   Reads segment tiles straight out of the full embedded sequence (no stack).
# --------------------------------------------------------------------------- #
def _segment_repr_kernel(emb_ref, w_in_ref, repr_ref):
    emb = emb_ref[...]                                     # [B, S, H] bf16
    B, S, H = emb.shape
    h = jnp.dot(emb.reshape(B * S, H), w_in_ref[...],
                preferred_element_type=jnp.float32)        # bf16 x bf16 -> f32 (MXU)
    h = jnp.tanh(h).reshape(B, S, H)                       # f32 elementwise
    repr_ref[...] = jnp.mean(h, axis=1)[None]              # [1, B, H] f32


def run_segment_reprs(emb_full, w_in, n_prev, seg_size):
    B, T, H = emb_full.shape
    return pl.pallas_call(
        _segment_repr_kernel,
        out_shape=jax.ShapeDtypeStruct((n_prev, B, H), jnp.float32),
        grid_spec=pltpu.PrefetchScalarGridSpec(
            num_scalar_prefetch=0,
            grid=(n_prev,),
            in_specs=[
                # segment s = columns [s*seg_size, (s+1)*seg_size) of emb_full
                pl.BlockSpec((B, seg_size, H), lambda s: (0, s, 0)),
                pl.BlockSpec((H, H), lambda s: (0, 0)),        # constant: fetched once
            ],
            out_specs=pl.BlockSpec((1, B, H), lambda s: (s, 0, 0)),
        ),
        compiler_params=pltpu.CompilerParams(dimension_semantics=("parallel",)),
    )(emb_full, w_in)


# --------------------------------------------------------------------------- #
# Kernel 1b: tiny sequential memory recurrence over the precomputed seg_reprs.
#   Resident output accumulator; the big matmuls were pulled out into 1a.
# --------------------------------------------------------------------------- #
def _recurrence_kernel(repr_ref, w_mem_ref, w_upd_ref, mem_ref):
    s = pl.program_id(0)

    @pl.when(s == 0)
    def _():
        # memory_state=None in the torch wrapper -> synthetic cell starts at zeros
        mem_ref[...] = jnp.zeros_like(mem_ref)

    mem = mem_ref[...]
    r = repr_ref[0]                                        # [B, H] f32
    mem_ref[...] = jnp.tanh(
        jnp.dot(mem, w_mem_ref[...], preferred_element_type=jnp.float32)
        + jnp.dot(r, w_upd_ref[...], preferred_element_type=jnp.float32))


def run_recurrence(seg_reprs, w_mem, w_upd):
    n, B, H = seg_reprs.shape
    return pl.pallas_call(
        _recurrence_kernel,
        out_shape=jax.ShapeDtypeStruct((B, H), jnp.float32),
        grid_spec=pltpu.PrefetchScalarGridSpec(
            num_scalar_prefetch=0,
            grid=(n,),
            in_specs=[
                pl.BlockSpec((1, B, H), lambda s: (s, 0, 0)),
                pl.BlockSpec((H, H), lambda s: (0, 0)),
                pl.BlockSpec((H, H), lambda s: (0, 0)),
            ],
            out_specs=pl.BlockSpec((B, H), lambda s: (0, 0)),   # resident accumulator
        ),
        compiler_params=pltpu.CompilerParams(dimension_semantics=("arbitrary",)),
    )(seg_reprs, w_mem, w_upd)


# --------------------------------------------------------------------------- #
# Kernel 2: fused last-segment logits + shifted cross-entropy.
#   grid = (row group g [parallel], vocab tile v [arbitrary, innermost]).
#   hidden for the current row group (all its batch rows) is computed once
#   (v == 0) into VMEM scratch; W_out tiles are streamed once per row group;
#   CE uses an online logsumexp + per-tile true-logit accumulator; the per-group
#   partial CE sum is written on the last vocab tile.
# --------------------------------------------------------------------------- #
def _logits_ce_kernel(emb_ref, mem_ref, labels_ref, w_in_ref, w_read_ref, w_out_ref,
                      logits_ref, loss_ref, hid_sc, m_sc, l_sc, tl_sc):
    v = pl.program_id(1)
    nv = pl.num_programs(1)
    tn = logits_ref.shape[-1]

    @pl.when(v == 0)
    def _():
        emb = emb_ref[...]                                 # [bt, S, H] bf16
        bt, S, H = emb.shape
        mem = mem_ref[:, 0, :]                             # [bt, H] f32
        mem_read = jnp.dot(mem, w_read_ref[...],
                           preferred_element_type=jnp.float32)      # [bt, H] f32
        h = jnp.dot(emb.reshape(bt * S, H), w_in_ref[...],
                    preferred_element_type=jnp.float32)             # [bt*S, H] f32
        h = h.reshape(bt, S, H) + mem_read[:, None, :]
        hid_sc[...] = jnp.tanh(h).reshape(bt * S, H).astype(hid_sc.dtype)  # bf16
        m_sc[...] = jnp.full_like(m_sc, -jnp.inf)
        l_sc[...] = jnp.zeros_like(l_sc)
        tl_sc[...] = jnp.zeros_like(tl_sc)

    # lane-dense logits tile for this vocab slice: [bt*S, tn]
    logits = jnp.dot(hid_sc[...], w_out_ref[...],
                     preferred_element_type=jnp.float32)
    logits_ref[...] = logits

    # online logsumexp over the vocab axis
    tile_max = jnp.max(logits, axis=-1, keepdims=True)              # [bt*S, 1]
    m_new = jnp.maximum(m_sc[...], tile_max)
    l_sc[...] = l_sc[...] * jnp.exp(m_sc[...] - m_new) + jnp.sum(
        jnp.exp(logits - m_new), axis=-1, keepdims=True)
    m_sc[...] = m_new

    # true-logit extraction for labels that fall inside this vocab tile
    labels = labels_ref[...].reshape(-1, 1)                         # [bt*S, 1] int32
    col = lax.broadcasted_iota(jnp.int32, logits.shape, 1) + v * tn
    tl_sc[...] += jnp.sum(jnp.where(col == labels, logits, 0.0),
                          axis=-1, keepdims=True)

    @pl.when(v == nv - 1)
    def _():
        per_tok = (m_sc[...] + jnp.log(l_sc[...])) - tl_sc[...]     # [bt*S, 1]
        valid = (labels_ref[...].reshape(-1, 1) >= 0).astype(jnp.float32)
        part = jnp.sum(per_tok * valid)
        loss_ref[...] = jnp.full(loss_ref.shape, part, jnp.float32)


def run_last_segment_fused(emb_last, memory_b1h, labels_bs1, w_in, w_read, w_out,
                           *, tn=256):
    B, S, H = emb_last.shape
    V = w_out.shape[1]
    tn = min(tn, V)
    assert V % tn == 0 and tn % 128 == 0, "vocab must be padded to the tile size"
    assert S % 8 == 0 and H % 128 == 0, "pad S to 8 and H to 128 for lane density"
    nv = V // tn
    bt = B                      # one row group: W_out streamed exactly once
    n_groups = B // bt

    logits_flat, loss_parts = pl.pallas_call(
        _logits_ce_kernel,
        out_shape=(
            jax.ShapeDtypeStruct((B * S, V), jnp.float32),       # logits (flat rows)
            jax.ShapeDtypeStruct((n_groups, 8, 128), jnp.float32),  # CE partial sums
        ),
        grid_spec=pltpu.PrefetchScalarGridSpec(
            num_scalar_prefetch=0,
            grid=(n_groups, nv),
            in_specs=[
                pl.BlockSpec((bt, S, H), lambda g, v: (g, 0, 0)),
                pl.BlockSpec((bt, 1, H), lambda g, v: (g, 0, 0)),
                pl.BlockSpec((bt, S, 1), lambda g, v: (g, 0, 0)),
                pl.BlockSpec((H, H), lambda g, v: (0, 0)),
                pl.BlockSpec((H, H), lambda g, v: (0, 0)),
                pl.BlockSpec((H, tn), lambda g, v: (0, v)),      # streamed w_out tiles
            ],
            out_specs=[
                pl.BlockSpec((bt * S, tn), lambda g, v: (g, v)),
                pl.BlockSpec((1, 8, 128), lambda g, v: (g, 0, 0)),
            ],
            scratch_shapes=[
                pltpu.VMEM((bt * S, H), jnp.bfloat16),   # hidden, reused across vocab
                pltpu.VMEM((bt * S, 1), jnp.float32),    # running max
                pltpu.VMEM((bt * S, 1), jnp.float32),    # running sum-exp
                pltpu.VMEM((bt * S, 1), jnp.float32),    # true-logit accumulator
            ],
        ),
        compiler_params=pltpu.CompilerParams(
            dimension_semantics=("parallel", "arbitrary"),
            vmem_limit_bytes=64 << 20),
    )(emb_last, memory_b1h, labels_bs1, w_in, w_read, w_out)

    return logits_flat.reshape(B, S, V), loss_parts


# --------------------------------------------------------------------------- #
# RecurrentWrapper-equivalent (JAX/Pallas)
# --------------------------------------------------------------------------- #
class RecurrentWrapper:
    def __init__(self, params, **rmt_kwargs):
        self.params = params
        self.rmt_config = rmt_kwargs

    def forward(self, input_ids, labels=None, labels_mask=None):
        p = self.params
        seg_size = self.rmt_config["segment_size"]
        B, T = input_ids.shape
        H = p["embed"].shape[1]

        # 'left' alignment: split points at multiples of seg_size (last may be short)
        split_inds = list(range(0, T, seg_size)) + [T]
        n_seg = len(split_inds) - 1
        last_start = split_inds[-2]

        # single bf16 embedding gather for the whole sequence (one XLA gather).
        # TODO(synk): DMA-gather embedding rows inside the kernel via
        # scalar-prefetched ids to avoid the HBM round trip of emb_full entirely.
        emb_full = jnp.take(p["embed"], input_ids, axis=0)          # [B, T, H] bf16

        if n_seg > 1:
            seg_reprs = run_segment_reprs(emb_full, p["w_in"],
                                          n_prev=n_seg - 1, seg_size=seg_size)
            memory = run_recurrence(seg_reprs, p["w_mem"], p["w_upd"])
        else:
            memory = jnp.zeros((B, H), jnp.float32)

        emb_last = emb_full[:, last_start:, :]
        S = emb_last.shape[1]
        if labels is not None:
            assert labels.shape[1] == S, "labels must span the last segment"
            # shifted labels: position t holds labels[:, t+1]; last position masked.
            shifted = jnp.concatenate(
                [labels[:, 1:].astype(jnp.int32),
                 jnp.full((B, 1), -1, jnp.int32)], axis=1)[:, :, None]
            # TODO(synk): labels_mask filtering (original filters labels but not
            # logits, which is shape-inconsistent); unsupported here.
        else:
            shifted = jnp.full((B, S, 1), -1, jnp.int32)

        logits, loss_parts = run_last_segment_fused(
            emb_last, memory.reshape(B, 1, H), shifted,
            p["w_in"], p["w_read"], p["w_out"],
            tn=self.rmt_config.get("vocab_tile", 256))

        out = {"logits": logits}
        if labels is not None:
            n_valid = jnp.maximum(
                jnp.sum((shifted[:, :, 0] >= 0).astype(jnp.float32)), 1.0)
            out["loss"] = jnp.sum(loss_parts[:, 0, 0]) / n_valid
        else:
            out["loss"] = jnp.float32(0.0)
        return out


def init_params(key, vocab, hidden):
    ks = jax.random.split(key, 6)
    s = 0.05
    f = lambda k, shape: s * jax.random.normal(k, shape, jnp.float32)
    return {
        # big matmul operands in bf16 (MXU-native), tiny recurrence weights in f32
        "embed": f(ks[0], (vocab, hidden)).astype(jnp.bfloat16),
        "w_in":  f(ks[1], (hidden, hidden)).astype(jnp.bfloat16),
        "w_mem": f(ks[2], (hidden, hidden)),
        "w_upd": f(ks[3], (hidden, hidden)),
        "w_read": f(ks[4], (hidden, hidden)),
        "w_out": f(ks[5], (hidden, vocab)).astype(jnp.bfloat16),
    }


# --------------------------------------------------------------------------- #
# Pure-JAX reference (mirrors the kernel's bf16/f32 mixed precision)
# --------------------------------------------------------------------------- #
def _mm_f32(x, w):
    lead = x.shape[:-1]
    y = jnp.dot(x.reshape(-1, x.shape[-1]), w, preferred_element_type=jnp.float32)
    return y.reshape(*lead, w.shape[-1])


def reference_forward(params, input_ids, labels, segment_size):
    B, T = input_ids.shape
    H = params["embed"].shape[1]
    split = list(range(0, T, segment_size)) + [T]
    segs = [input_ids[:, s:e] for s, e in zip(split, split[1:])]

    mem = jnp.zeros((B, H), jnp.float32)
    for seg in segs[:-1]:
        emb = jnp.take(params["embed"], seg, axis=0)
        r = jnp.mean(jnp.tanh(_mm_f32(emb, params["w_in"])), axis=1)
        mem = jnp.tanh(_mm_f32(mem, params["w_mem"]) + _mm_f32(r, params["w_upd"]))

    emb_last = jnp.take(params["embed"], segs[-1], axis=0)
    hidden = jnp.tanh(_mm_f32(emb_last, params["w_in"])
                      + _mm_f32(mem, params["w_read"])[:, None, :])
    logits = _mm_f32(hidden.astype(jnp.bfloat16), params["w_out"])

    shift_logits = logits[:, :-1, :]
    shift_labels = labels[:, 1:].astype(jnp.int32)
    lse = jax.scipy.special.logsumexp(shift_logits, axis=-1)
    tl = jnp.take_along_axis(shift_logits, shift_labels[..., None], axis=-1)[..., 0]
    return logits, jnp.mean(lse - tl)


if __name__ == "__main__":
    # small but lane-dense shapes: 3 segments of 128 tokens, H=128, V=512
    B, SEG, N_SEG, H, V = 2, 128, 3, 128, 512
    T = SEG * N_SEG

    key = jax.random.PRNGKey(0)
    k_param, k_ids, k_lab = jax.random.split(key, 3)
    params = init_params(k_param, V, H)

    input_ids = jax.random.randint(k_ids, (B, T), 0, V, dtype=jnp.int32)
    labels = jax.random.randint(k_lab, (B, SEG), 0, V, dtype=jnp.int32)  # last-seg labels

    wrapper = RecurrentWrapper(params, segment_size=SEG, segment_alignment="left",
                               k2=-1, max_n_segments=N_SEG, vocab_tile=256)
    out = wrapper.forward(input_ids, labels=labels)

    logits = jax.block_until_ready(out["logits"])
    loss = jax.block_until_ready(out["loss"])
    assert logits.shape == (B, SEG, V)
    assert bool(jnp.isfinite(loss))

    ref_logits, ref_loss = reference_forward(params, input_ids, labels, SEG)
    assert float(jnp.max(jnp.abs(logits - ref_logits))) < 5e-2
    assert abs(float(loss) - float(ref_loss)) < 5e-2 * max(1.0, abs(float(ref_loss)))

    print("KERNEL_OK")
</pallas_src>

<mosaic_0001>
module attributes {stable_mosaic.version = 11 : i64} {
  func.func @_segment_repr_kernel(%arg0: i32, %arg1: memref<2x128x128xbf16, #tpu.memory_space<vmem>>, %arg2: memref<128x128xbf16, #tpu.memory_space<vmem>>, %arg3: memref<1x2x128xf32, #tpu.memory_space<vmem>>) attributes {dimension_semantics = [#tpu.dimension_semantics<parallel>], iteration_bounds = array<i64: 2>, scalar_prefetch = 0 : i64, scratch_operands = 0 : i64, tpu.core_type = #tpu.core_type<tc>, window_params = [{transform_indices = @transform_0, window_bounds = array<i64: 2, 128, 128>}, {pipeline_mode = #tpu.pipeline_mode<synchronous>, transform_indices = @transform_1, window_bounds = array<i64: 128, 128>}, {transform_indices = @transform_2, window_bounds = array<i64: 1, 2, 128>}]} {
    %c0 = arith.constant 0 : index
    %c0_0 = arith.constant 0 : index
    %c0_1 = arith.constant 0 : index
    %0 = vector.load %arg1[%c0, %c0_0, %c0_1] : memref<2x128x128xbf16, #tpu.memory_space<vmem>>, vector<2x128x128xbf16>
    %1 = vector.shape_cast %0 : vector<2x128x128xbf16> to vector<256x128xbf16>
    %c0_2 = arith.constant 0 : index
    %c0_3 = arith.constant 0 : index
    %2 = vector.load %arg2[%c0_2, %c0_3] : memref<128x128xbf16, #tpu.memory_space<vmem>>, vector<128x128xbf16>
    %cst = arith.constant dense<0.000000e+00> : vector<256x128xf32>
    %3 = tpu.matmul %1, %2, %cst {dimension_numbers = #tpu.dot_dimension_numbers<[1], [0], [0], [1], [0, 0, 1, 1], [], []>} : vector<256x128xbf16>, vector<128x128xbf16>, vector<256x128xf32> -> vector<256x128xf32>
    %4 = math.tanh %3 : vector<256x128xf32>
    %5 = vector.shape_cast %4 : vector<256x128xf32> to vector<2x128x128xf32>
    %cst_4 = arith.constant dense<0.000000e+00> : vector<2x128xf32>
    %6 = vector.multi_reduction <add>, %5, %cst_4 [1] : vector<2x128x128xf32> to vector<2x128xf32>
    %cst_5 = arith.constant 1.280000e+02 : f32
    %7 = vector.broadcast %cst_5 : f32 to vector<2x128xf32>
    %8 = arith.divf %6, %7 : vector<2x128xf32>
    %9 = vector.shape_cast %8 : vector<2x128xf32> to vector<1x2x128xf32>
    %c0_6 = arith.constant 0 : index
    %c0_7 = arith.constant 0 : index
    %c0_8 = arith.constant 0 : index
    %10 = vector.load %arg3[%c0_6, %c0_7, %c0_8] : memref<1x2x128xf32, #tpu.memory_space<vmem>>, vector<1x2x128xf32>
    tpu.vector_store %arg3[%c0_6, %c0_7, %c0_8], %9 {strides = array<i32>} : memref<1x2x128xf32, #tpu.memory_space<vmem>>, vector<1x2x128xf32>,
    return
  }
  func.func @transform_0(%arg0: i32) -> (i32, i32, i32) {
    %c0_i32 = arith.constant 0 : i32
    %c0_i32_0 = arith.constant 0 : i32
    %c0_i32_1 = arith.constant 0 : i32
    return %c0_i32, %arg0, %c0_i32_0 : i32, i32, i32
  }
  func.func @transform_1(%arg0: i32) -> (i32, i32) {
    %c0_i32 = arith.constant 0 : i32
    %c0_i32_0 = arith.constant 0 : i32
    %c0_i32_1 = arith.constant 0 : i32
    return %c0_i32, %c0_i32_0 : i32, i32
  }
  func.func @transform_2(%arg0: i32) -> (i32, i32, i32) {
    %c0_i32 = arith.constant 0 : i32
    %c0_i32_0 = arith.constant 0 : i32
    %c0_i32_1 = arith.constant 0 : i32
    return %arg0, %c0_i32, %c0_i32_0 : i32, i32, i32
  }
}

</mosaic_0001>

<bundles_post_ra>
// kernel: tpu_custom_call.1
= control target key start
LH: loop header
LB: loop body
LE: loop exit
PB: predicated region body
PF: predicated region fallthrough
CT: control target
= control target key end

     0   :  { %7 = vsyncpa [#allocation3], 0  ;;  %s1338_s0 = inlined_call_operand.hbm [shape: bf16[2,384,128], index: 0, kind: input, shape index: {}]   ;;  %s1339_s1 = inlined_call_operand.hbm [shape: bf16[128,128], index: 1, kind: input, shape index: {}]   ;;  %s1340_s2 = inlined_call_operand.hbm [shape: f32[2,2,128], index: 2, kind: output, shape index: {}]  }
   0x1   :  { %9 = vsyncpa [#allocation3 + $0x1], 0 }
   0x2   :  { %10 = vsyncpa [#allocation6], 0 }
   0x3   :  { %11 = vsyncpa [#allocation4], 0 }
   0x4   :  { %13 = vsyncpa [#allocation4 + $0x1], 0  ;;  %s1144_s9 = smov 0   ;;  %s1146_s10 = smov 0  }
   0x5   :  { %s1148_s11 = smov 0   ;;  %s1150_s12 = smov 0  }
   0x6 LB: > { %s1165_s13 = sadd.s32 4294967295, %s1117_s12   ;;  %s734_s14 = sadd.s32 4294967294, %s1117_s12   ;;  %s1117_s12 = sphi %s1150_s12, %s1362_s12   ;;  %s1113_s11 = sphi %s1148_s11, %s1361_s11   ;;  %s1109_s10 = sphi %s1146_s10, %s1360_s10   ;;  %s1105_s9 = sphi %s1144_s9, %s1359_s9  }
   0x7   : > { %s1169_s15 = sadd.s32 1, %s1117_s12   ;;  %s26_s16 = sadd.s32 1, %s1113_s11 }
   0x8   : > { %s23_s17 = ssub.s32 %s1117_s12, %s1169_s15  ;;  %p33_p0 = scmp.ne.s32.totalorder %s1113_s11, %s1109_s10 }
   0x9   : > { %p24_p1 = scmp.eq.s32.totalorder %s23_s17, 0  ;;  %p34_p2 = scmp.eq.s32.totalorder %s1117_s12, 0 }
   0xa   : > { %p39_p3 = scmp.ne.s32.totalorder %s1109_s10, %s1105_s9  ;;  %p1341_p4 = scmp.eq.s32.totalorder %s1165_s13, 0 }
   0xb   : > { %s1181_s18 = scalar_select %p24_p1, %s1113_s11, %s26_s16  }
   0xc   : > { %p1183_p5 = por %p34_p2, %p33_p0  ;;  %p1189_p6 = por %p1341_p4, %p39_p3 }
   0xd   : > { %p84_p7 = scmp.eq.s32.totalorder %s1165_s13, 1  ;;  %p90_p8 = scmp.eq.s32.totalorder %s734_s14, 1 }
   0xe   : > { %s1346_s19 = scalar_select %p1183_p5, 1, 0 }
   0xf   : > { %s1347_s20 = scalar_select %p1189_p6, 1, 0 }
  0x10   : > { %p735_p9 = scmp.ge.s32.totalorder %s1117_s12, 1  ;;  %p97_p10 = scmp.lt.s32.totalorder %s1117_s12, 3 }
  0x11   : > { %p1196_p11 = por %p84_p7, %p33_p0  ;;  %p1200_p12 = por %p90_p8, %p39_p3 }
  0x12   : > { %p1204_p13 = pnand %p735_p9, %p97_p10  ;;  %s1119_s24 = smov [#allocation5]  }
  0x13   : > { %s1348_s21 = scalar_select %p1196_p11, 1, 0 }
  0x14   : > { %s1349_s22 = scalar_select %p1200_p12, 1, 0 }
  0x15   : > { %s1350_s23 = scalar_select %p1204_p13, 1, 0 }
  0x16   : > { %p879_p1 = pneg %p1204_p13  ;;  %s109_s25 = sshll.u32 %s1119_s24, 4  ;;  %s110_s25 = int_to_ptr.vmem [resolvable:$true] %s109_s25 }
  0x17   : > { %s1019_s29 = scalar_lea.hbm %s1339_s1, 1024 }
  0x18   : > { %p1212_p2 = pnand %p879_p1, %p1341_p4  ;;  %p1020_p0 = scmp.ne.s32.totalorder %s1339_s1, %s1019_s29 }
  0x19   : > { %p1026_p9 = scmp.lt.u32.totalorder %s1019_s29, %s1339_s1 }
  0x1a   : > { %p1021_p3 = pneg %p1212_p2 }
  0x1c   : > { %p1022_p7 = pnand %p1021_p3, %p1020_p0 }
  0x1e   : > { %p1023_p8 = pneg %p1022_p7 }
  0x20   : > { %p1028_p10 = pnand %p1026_p9, %p1023_p8 }
  0x22   : > { %1031 = shalt.err (!%p1028_p10)
}
  0x23   : > { %s1032_s6 = scalar_lea.vmem %s110_s25, 1024  ;;  %p1040_p11 = scmp.lt.s32.totalorder %s110_s25, %s110_s25 }
  0x24   : > { %p1033_p1 = scmp.ne.s32.totalorder %s110_s25, %s1032_s6  ;;  %p1041_p6 = scmp.lt.s32.totalorder %s1032_s6, %s1032_s6 }
  0x26   : > { %p1035_p4 = pnand %p1033_p1, %p1021_p3  ;;  %p1042_p13 = por %p1041_p6, %p1040_p11 }
  0x28   : > { %p1036_p12 = pneg %p1035_p4 }
  0x2a   : > { %p1043_p5 = pnand %p1042_p13, %p1036_p12 }
  0x2c   : > { %1046 = shalt.err (!%p1043_p5)
}
  0x2d   : > { %s1120_s7 = smov 64   ;;  %s1121_s8 = smov 4  }
  0x2e   : > { %882 = dma.hbm_to_vmem [thread:$0]  (!%p1212_p2), %s1339_s1, 1024, %s110_s25, [#allocation6], %s1120_s7, %s1120_s7, %s1121_s8  }
  0x2f   : > { %p737_p0 = scmp.ge.s32.totalorder %s1117_s12, 2 }
  0x31   : > { %119 = sbr.rel (%p737_p0) target bundleno = 71 (0x47), region = 20 }
  0x38   : > { %s123_s17 = sand.u32 1, %s1113_s11   ;;  %s775_s24 = sshll.u32 %s1117_s12, 10 }
  0x39   : > { %s738_s26 = sshll.u32 %s123_s17, 7  ;;  %s133_s25 = scalar_lea.hbm %s1338_s0, %s775_s24 }
  0x3a   : > { %p1352_p4 = scmp.ne.s32.totalorder %s1346_s19, 0  ;;  %s127_s30 = scalar_lea.vmem [#allocation2], %s738_s26 }
  0x3b   : > { %s146_s3 = sshll.u32 %s127_s30, 4  ;;  %s1122_s5 = smov 3072   ;;  %s147_s3 = int_to_ptr.vmem [resolvable:$true] %s146_s3 }
  0x3c   : > { %s866_s29 = scalar_select %p1352_p4, [#allocation0], [#allocation10] }
  0x3d   : > { %867 = sst [smem:[#allocation9]] (%p1352_p4), %s1122_s5  ;;  %s1123_s6 = smov 1024  }
  0x3e   : > { %s138_s4 = sld [smem:[%s866_s29]]   ;;  %s1124_s7 = smov 16  }
  0x3f   : > { %868 = sst [smem:[#allocation9 + $0x1]] (%p1352_p4), %s1123_s6  ;;  %s1125_s8 = smov 64  }
  0x40   : > { %869 = sst [smem:[#allocation9 + $0x2]] (%p1352_p4), %s1124_s7  ;;  %s1126_s16 = smov 4  }
  0x41   : > { %870 = sst [smem:[#allocation9 + $0x3]] (%p1352_p4), %s1125_s8  ;;  %s124_s26 = scalar_lea.sflag [#allocation3], %s123_s17 }
  0x42   : > { %871 = sst [smem:[#allocation9 + $0x4]] (%p1352_p4), %s1125_s8  ;;  %s1127_s27 = smov [#allocation8]  }
  0x43   : > { %872 = sst [smem:[#allocation9 + $0x5]] (%p1352_p4), %s1126_s16 }
  0x44   : > { %s741_s14 = sshll.u32 %s138_s4, 26 }
  0x45   : > { %s742_s24 = sadd.s32 134217728, %s741_s14 }
  0x46   : > { %873 = dma.general (%p1352_p4), %s133_s25, 2048, %s147_s3, %s124_s26, %s1127_s27, [#allocation9], %s742_s24, 0  }
  0x47 PF: > { %p1353_p5 = scmp.ne.s32.totalorder %s1350_s23, 0 }
  0x48   : > { %s1259_s28 = sand.u32 (!%p1353_p5), 1, %s1109_s10   ;;  %p1354_p6 = scmp.ne.s32.totalorder (!%p1353_p5), %s1347_s20, 0 }
  0x49   : > { %171 = sbr.rel (%p1353_p5) target bundleno = 408 (0x198), region = 28  ;;  %s744_s29 = sshll.u32 (!%p1353_p5), %s1259_s28, 7 }
  0x4a   : > { %s174_s30 = scalar_lea.sflag (!%p1353_p5), [#allocation3], %s1259_s28  ;;  %s1263_s4 = scalar_lea.vmem (!%p1353_p5), [#allocation2], %s744_s29 }
  0x50   : > { %1092 = dma.done.wait (%p1354_p6), %s174_s30, 2048  }
  0x51   : > { %1094 = vsyncadd (%p1354_p6), %s174_s30, 4294965248  ;;  %p1355_p11 = scmp.eq.s32.totalorder %s1165_s13, 0 }
  0x53   : > { %1096 = dma.done.wait (%p1355_p11), [#allocation6], 1024   ;;  %p1356_p12 = pmov %p1355_p11 }
  0x54   : > { %v931_v0 = vld [vmem:[#allocation5] sm:$0xff]   ;;  %v932_v1 = vld [vmem:[#allocation5 + $0x8] sm:$0xff]   ;;  %v933_v2 = vld [vmem:[#allocation5 + $0x10] sm:$0xff]   ;;  %s746_s19 = sshll.u32 %s1259_s28, 1  ;;  %s772_s20 = sshll.u32 %s1165_s13, 5  ;;  %vm636_vm0 = vcmask 1041409  }
  0x55   : > { %1098 = vsyncadd (%p1356_p12), [#allocation6], 4294966272  ;;  %800 = vmatprep.subr.bf16.mxu0 %v931_v0  ;;  %848 = vmatprep.subr.bf16.mxu1 %v931_v0  ;;  %v934_v3 = vld [vmem:[#allocation5 + $0x18] sm:$0xff]   ;;  %v939_v4 = vld [vmem:[%s1263_s4] sm:$0xff]   ;;  %s201_s23 = scalar_lea.vmem [#allocation7], %s746_s19  ;;  %s1294_s5 = scalar_lea.hbm %s1340_s2, %s772_s20 }
  0x56   : > { %801 = vmatpush3.bf16.msra.mxu0 %v931_v0  ;;  %856 = vmatpush3.bf16.msra.mxu1 %v931_v0  ;;  %v940_v5 = vld [vmem:[%s1263_s4 + $0x40] sm:$0xff]   ;;  %v936_v7 = vld [vmem:[#allocation5 + $0x28] sm:$0xff]   ;;  %v937_v8 = vld [vmem:[#allocation5 + $0x30] sm:$0xff]   ;;  %s654_s17 = sshll.u32 %s201_s23, 4  ;;  %s641_s6 = scalar_lea.sflag [#allocation4], %s1259_s28  ;;  %s1296_s17 = int_to_ptr.vmem [resolvable:$true] %s654_s17 }
  0x57   : > { %802 = vmatprep.subr.bf16.mxu0 %v932_v1  ;;  %849 = vmatprep.subr.bf16.mxu1 %v932_v1  ;;  %v935_v6 = vld [vmem:[#allocation5 + $0x20] sm:$0xff]   ;;  %v938_v9 = vld [vmem:[#allocation5 + $0x38] sm:$0xff]   ;;  %v941_v10 = vld [vmem:[%s1263_s4 + $0x8] sm:$0xff]   ;;  %s1047_s7 = scalar_lea.vmem %s1296_s17, 32  ;;  %p1357_p2 = scmp.ne.s32.totalorder %s1348_s21, 0 }
  0x58   : > { %816 = vmatprep.mubr.bf16.mxu0 %v939_v4  ;;  %832 = vmatprep.mubr.bf16.mxu1 %v940_v5  ;;  %v942_v11 = vld [vmem:[%s1263_s4 + $0x48] sm:$0xff]   ;;  %v943_v12 = vld [vmem:[%s1263_s4 + $0x10] sm:$0xff]   ;;  %v945_v14 = vld [vmem:[%s1263_s4 + $0x18] sm:$0xff]   ;;  %p1048_p13 = scmp.ne.s32.totalorder %s1296_s17, %s1047_s7  ;;  %s1128_s13 = smov [#allocation7]  }
  0x59   : > { %v944_v13 = vld [vmem:[%s1263_s4 + $0x50] sm:$0xff]   ;;  %v946_v15 = vld [vmem:[%s1263_s4 + $0x58] sm:$0xff]   ;;  %v947_v16 = vld [vmem:[%s1263_s4 + $0x20] sm:$0xff]   ;;  %s1051_s8 = sshll.u32 %s1128_s13, 4  ;;  %s1052_s8 = int_to_ptr.vmem [resolvable:$false] %s1051_s8 }
  0x5a   : > { %803 = vmatpush3.bf16.msra.mxu0 %v932_v1  ;;  %857 = vmatpush3.bf16.msra.mxu1 %v932_v1  ;;  %v948_v17 = vld [vmem:[%s1263_s4 + $0x60] sm:$0xff]   ;;  %v949_v18 = vld [vmem:[%s1263_s4 + $0x28] sm:$0xff]   ;;  %v951_v20 = vld [vmem:[%s1263_s4 + $0x30] sm:$0xff]   ;;  %p1049_p3 = pnand %p1048_p13, %p1357_p2  ;;  %s1053_s14 = scalar_lea.vmem %s1052_s8, 64 }
  0x5b   : > { %804 = vmatprep.subr.bf16.mxu0 %v933_v2  ;;  %850 = vmatprep.subr.bf16.mxu1 %v933_v2  ;;  %v950_v19 = vld [vmem:[%s1263_s4 + $0x68] sm:$0xff]   ;;  %v952_v21 = vld [vmem:[%s1263_s4 + $0x70] sm:$0xff]   ;;  %v953_v22 = vld [vmem:[%s1263_s4 + $0x38] sm:$0xff]   ;;  %p1054_p8 = scmp.lt.s32.totalorder %s1296_s17, %s1052_s8  ;;  %p1055_p9 = scmp.lt.s32.totalorder %s1053_s14, %s1047_s7 }
  0x5c   : > { %v954_v23 = vld [vmem:[%s1263_s4 + $0x78] sm:$0xff]   ;;  %p1050_p7 = pneg %p1049_p3 }
  0x5d   : > { %p1056_p10 = por %p1055_p9, %p1054_p8 }
  0x5e   : > { %805 = vmatpush3.bf16.msra.mxu0 %v933_v2  ;;  %858 = vmatpush3.bf16.msra.mxu1 %v933_v2 }
  0x5f   : > { %806 = vmatprep.subr.bf16.mxu0 %v934_v3  ;;  %851 = vmatprep.subr.bf16.mxu1 %v934_v3  ;;  %p1057_p1 = pnand %p1056_p10, %p1050_p7 }
  0x62   : > { %807 = vmatpush3.bf16.msra.mxu0 %v934_v3  ;;  %859 = vmatpush3.bf16.msra.mxu1 %v934_v3 }
  0x63   : > { %808 = vmatprep.subr.bf16.mxu0 %v935_v6  ;;  %852 = vmatprep.subr.bf16.mxu1 %v935_v6 }
  0x66   : > { %809 = vmatpush3.bf16.msra.mxu0 %v935_v6  ;;  %860 = vmatpush3.bf16.msra.mxu1 %v935_v6 }
  0x67   : > { %810 = vmatprep.subr.bf16.mxu0 %v936_v7  ;;  %853 = vmatprep.subr.bf16.mxu1 %v936_v7 }
  0x6a   : > { %811 = vmatpush3.bf16.msra.mxu0 %v936_v7  ;;  %861 = vmatpush3.bf16.msra.mxu1 %v936_v7 }
  0x6b   : > { %812 = vmatprep.subr.bf16.mxu0 %v937_v8  ;;  %854 = vmatprep.subr.bf16.mxu1 %v937_v8 }
  0x6e   : > { %813 = vmatpush3.bf16.msra.mxu0 %v937_v8  ;;  %862 = vmatpush3.bf16.msra.mxu1 %v937_v8 }
  0x6f   : > { %814 = vmatprep.subr.bf16.mxu0 %v938_v9  ;;  %855 = vmatprep.subr.bf16.mxu1 %v938_v9 }
  0x72   : > { %815 = vmatpush3.bf16.msra.mxu0 %v938_v9  ;;  %863 = vmatpush3.bf16.msra.mxu1 %v938_v9 }
  0x75   : > { %817 = vmatmul.mubr.bf16.vlgmr.msra.gmra.mrb[0].mxu0 %v941_v10  ;;  %833 = vmatmul.mubr.bf16.vlgmr.msra.gmra.mrb[0].mxu1 %v942_v11 }
  0x76   : > { %820 = vmatprep.mubr.bf16.mxu0 %v943_v12  ;;  %836 = vmatprep.mubr.bf16.mxu1 %v944_v13 }
  0x7d   : > { %821 = vmatmul.mubr.bf16.gmra.mrb[4].mxu0 %v945_v14  ;;  %837 = vmatmul.mubr.bf16.gmra.mrb[4].mxu1 %v946_v15 }
  0x7e   : > { %824 = vmatprep.mubr.bf16.mxu0 %v947_v16  ;;  %840 = vmatprep.mubr.bf16.mxu1 %v948_v17 }
  0x85   : > { %825 = vmatmul.mubr.bf16.gmra.mrb[8].mxu0 %v949_v18  ;;  %841 = vmatmul.mubr.bf16.gmra.mrb[8].mxu1 %v950_v19 }
  0x86   : > { %828 = vmatprep.mubr.bf16.mxu0 %v951_v20  ;;  %844 = vmatprep.mubr.bf16.mxu1 %v952_v21 }
  0x8d   : > { %829 = vmatmul.mubr.bf16.gmra.mrb[12].mxu0 %v953_v22  ;;  %845 = vmatmul.mubr.bf16.gmra.mrb[12].mxu1 %v954_v23 }
 0x148   : > { %v818_v24 = vpop.f32.mrb[0].mxu0  ;;  %v834_v25 = vpop.f32.mrb[0].mxu1 }
 0x149   : > { %v430_v26 = vpop.f32.mrb[1].mxu0  ;;  %v494_v27 = vpop.f32.mrb[1].mxu1  ;;  %955 = vtanh.f32 %v818_v24 }
 0x14a   : > { %v819_v28 = vpop.f32.mrb[2].mxu0  ;;  %v835_v29 = vpop.f32.mrb[2].mxu1  ;;  %957 = vtanh.f32 %v834_v25 }
 0x14b   : > { %v433_v30 = vpop.f32.mrb[3].mxu0  ;;  %v497_v31 = vpop.f32.mrb[3].mxu1  ;;  %959 = vtanh.f32 %v430_v26 }
 0x14c   : > { %961 = vtanh.f32 %v494_v27 }
 0x14d   : > { %963 = vtanh.f32 %v433_v30 }
 0x14e   : > { %965 = vtanh.f32 %v497_v31 }
 0x14f   : > { %967 = vtanh.f32 %v819_v28 }
 0x150   : > { %v822_v32 = vpop.f32.mrb[4].mxu0  ;;  %v838_v33 = vpop.f32.mrb[4].mxu1  ;;  %969 = vtanh.f32 %v835_v29 }
 0x151   : > { %v446_v34 = vpop.f32.mrb[5].mxu0  ;;  %v510_v35 = vpop.f32.mrb[5].mxu1 }
 0x152   : > { %v823_v36 = vpop.f32.mrb[6].mxu0  ;;  %v839_v37 = vpop.f32.mrb[6].mxu1  ;;  %971 = vtanh.f32 %v446_v34 }
 0x153   : > { %v449_v38 = vpop.f32.mrb[7].mxu0  ;;  %v513_v39 = vpop.f32.mrb[7].mxu1  ;;  %973 = vtanh.f32 %v510_v35 }
 0x154   : > { %v956_v40 = vpop.eup %955  ;;  %975 = vtanh.f32 %v822_v32 }
 0x155   : > { %v958_v41 = vpop.eup %957  ;;  %977 = vtanh.f32 %v838_v33 }
 0x156   : > { %v960_v42 = vpop.eup %959  ;;  %979 = vtanh.f32 %v449_v38 }
 0x157   : > { %v962_v43 = vpop.eup %961  ;;  %981 = vtanh.f32 %v513_v39 }
 0x158   : > { %v826_v44 = vpop.f32.mrb[8].mxu0  ;;  %v842_v45 = vpop.f32.mrb[8].mxu1  ;;  %983 = vtanh.f32 %v823_v36 }
 0x159   : > { %v964_v46 = vpop.eup %963  ;;  %v462_v47 = vpop.f32.mrb[9].mxu0  ;;  %985 = vtanh.f32 %v839_v37 }
 0x15a   : > { %v526_v48 = vpop.f32.mrb[9].mxu1  ;;  %v966_v49 = vpop.eup %965  ;;  %v589_v50 = vadd.f32 %v964_v46, %v960_v42  ;;  %987 = vtanh.f32 %v462_v47 }
 0x15b   : > { %v827_v51 = vpop.f32.mrb[10].mxu0  ;;  %v843_v52 = vpop.f32.mrb[10].mxu1  ;;  %v610_v54 = vadd.f32 %v966_v49, %v962_v43  ;;  %989 = vtanh.f32 %v526_v48 }
 0x15c   : > { %v968_v53 = vpop.eup %967  ;;  %v465_v55 = vpop.f32.mrb[11].mxu0  ;;  %v590_v58 = vadd.f32 %v956_v40, %v589_v50  ;;  %991 = vtanh.f32 %v826_v44 }
 0x15d   : > { %v529_v56 = vpop.f32.mrb[11].mxu1  ;;  %v970_v57 = vpop.eup %969  ;;  %v611_v60 = vadd.f32 %v958_v41, %v610_v54  ;;  %993 = vtanh.f32 %v842_v45 }
 0x15e   : > { %v972_v59 = vpop.eup %971  ;;  %v591_v62 = vadd.f32 %v968_v53, %v590_v58  ;;  %995 = vtanh.f32 %v465_v55 }
 0x15f   : > { %v974_v61 = vpop.eup %973  ;;  %v612_v0 = vadd.f32 %v970_v57, %v611_v60  ;;  %997 = vtanh.f32 %v529_v56 }
 0x160   : > { %v976_v63 = vpop.eup %975  ;;  %v592_v2 = vadd.f32 %v972_v59, %v591_v62  ;;  %v830_v3 = vpop.f32.mrb[12].mxu0  ;;  %999 = vtanh.f32 %v827_v51 }
 0x161   : > { %v978_v1 = vpop.eup %977  ;;  %v846_v4 = vpop.f32.mrb[12].mxu1  ;;  %v613_v6 = vadd.f32 %v974_v61, %v612_v0  ;;  %1001 = vtanh.f32 %v843_v52 }
 0x162   : > { %v980_v5 = vpop.eup %979  ;;  %v478_v7 = vpop.f32.mrb[13].mxu0 }
 0x163   : > { %v542_v8 = vpop.f32.mrb[13].mxu1  ;;  %v982_v9 = vpop.eup %981  ;;  %v593_v10 = vadd.f32 %v980_v5, %v592_v2  ;;  %1003 = vtanh.f32 %v478_v7 }
 0x164   : > { %v831_v11 = vpop.f32.mrb[14].mxu0  ;;  %v847_v12 = vpop.f32.mrb[14].mxu1  ;;  %v614_v14 = vadd.f32 %v982_v9, %v613_v6  ;;  %1005 = vtanh.f32 %v542_v8 }
 0x165   : > { %v984_v13 = vpop.eup %983  ;;  %v481_v15 = vpop.f32.mrb[15].mxu0  ;;  %v594_v18 = vadd.f32 %v976_v63, %v593_v10 }
 0x166   : > { %v545_v16 = vpop.f32.mrb[15].mxu1  ;;  %v986_v17 = vpop.eup %985  ;;  %v615_v20 = vadd.f32 %v978_v1, %v614_v14  ;;  %1007 = vtanh.f32 %v481_v15 }
 0x167   : > { %v988_v19 = vpop.eup %987  ;;  %v595_v22 = vadd.f32 %v984_v13, %v594_v18  ;;  %1009 = vtanh.f32 %v545_v16 }
 0x168   : > { %v990_v21 = vpop.eup %989  ;;  %v616_v24 = vadd.f32 %v986_v17, %v615_v20  ;;  %1011 = vtanh.f32 %v830_v3 }
 0x169   : > { %v992_v23 = vpop.eup %991  ;;  %v596_v26 = vadd.f32 %v988_v19, %v595_v22  ;;  %1013 = vtanh.f32 %v846_v4 }
 0x16a   : > { %v994_v25 = vpop.eup %993  ;;  %v617_v28 = vadd.f32 %v990_v21, %v616_v24  ;;  %1015 = vtanh.f32 %v831_v11 }
 0x16b   : > { %v996_v27 = vpop.eup %995  ;;  %1017 = vtanh.f32 %v847_v12 }
 0x16c   : > { %v998_v29 = vpop.eup %997  ;;  %v597_v30 = vadd.f32 %v996_v27, %v596_v26 }
 0x16d   : > { %v1000_v31 = vpop.eup %999  ;;  %v618_v32 = vadd.f32 %v998_v29, %v617_v28 }
 0x16e   : > { %v1002_v33 = vpop.eup %1001  ;;  %v598_v34 = vadd.f32 %v992_v23, %v597_v30 }
 0x16f   : > { %v1004_v35 = vpop.eup %1003  ;;  %v619_v36 = vadd.f32 %v994_v25, %v618_v32 }
 0x170   : > { %v1006_v37 = vpop.eup %1005  ;;  %v599_v38 = vadd.f32 %v1000_v31, %v598_v34 }
 0x171   : > { %v620_v39 = vadd.f32 %v1002_v33, %v619_v36  ;;  %v1008_v41 = vpop.eup %1007 }
 0x172   : > { %v600_v40 = vadd.f32 %v1004_v35, %v599_v38  ;;  %v1010_v43 = vpop.eup %1009 }
 0x173   : > { %v621_v42 = vadd.f32 %v1006_v37, %v620_v39  ;;  %v1012_v45 = vpop.eup %1011 }
 0x174   : > { %v601_v44 = vadd.f32 %v1008_v41, %v600_v40  ;;  %v1014_v47 = vpop.eup %1013 }
 0x175   : > { %v622_v46 = vadd.f32 %v1010_v43, %v621_v42  ;;  %v1016_v49 = vpop.eup %1015 }
 0x176   : > { %v602_v48 = vadd.f32 %v1012_v45, %v601_v44  ;;  %v1018_v51 = vpop.eup %1017 }
 0x177   : > { %v623_v50 = vadd.f32 %v1014_v47, %v622_v46 }
 0x178   : > { %v603_v52 = vadd.f32 %v1016_v49, %v602_v48 }
 0x179   : > { %v624_v53 = vadd.f32 %v1018_v51, %v623_v50 }
 0x17a   : > { %v604_v54 = vrot.slane %v603_v52, 4 }
 0x17b   : > { %v625_v55 = vrot.slane %v624_v53, 4 }
 0x17c   : > { %v605_v56 = vadd.f32 %v604_v54, %v603_v52 }
 0x17d   : > { %v626_v57 = vadd.f32 %v625_v55, %v624_v53 }
 0x17e   : > { %v606_v58 = vrot.slane %v605_v56, 2 }
 0x17f   : > { %v627_v59 = vrot.slane %v626_v57, 2 }
 0x180   : > { %v607_v60 = vadd.f32 %v606_v58, %v605_v56 }
 0x181   : > { %v628_v61 = vadd.f32 %v627_v59, %v626_v57 }
 0x182   : > { %v608_v62 = vrot.slane %v607_v60, 1 }
 0x183   : > { %v629_v63 = vrot.slane %v628_v61, 1 }
 0x184   : > { %v609_v0 = vadd.f32 %v608_v62, %v607_v60 }
 0x185   : > { %v630_v1 = vadd.f32 %v629_v63, %v628_v61 }
 0x186   : > { %v632_v2 = vmul.f32 0.0078125, %v609_v0 }
 0x187   : > { %v633_v3 = vmul.f32 0.0078125, %v630_v1 }
 0x189   : > { %v637_v4 = vsel %vm636_vm0, %v633_v3, %v632_v2 }
 0x18a   : > { %639 = vst [vmem:[%s201_s23] sm:$0x3] %v637_v4 }
 0x18b   : > { %1060 = shalt.err (!%p1057_p1)
}
 0x18c   : > { %s1061_s16 = scalar_lea.hbm %s1294_s5, 32  ;;  %s1065_s27 = scalar_lea.hbm %s1340_s2, 64 }
 0x18d   : > { %p1062_p4 = scmp.ne.s32.totalorder %s1294_s5, %s1061_s16  ;;  %p1066_p11 = scmp.lt.u32.totalorder %s1294_s5, %s1340_s2 }
 0x18e   : > { %p1067_p12 = scmp.lt.u32.totalorder %s1065_s27, %s1061_s16  ;;  %p1069_p3 = scmp.lt.u32.totalorder %s1061_s16, %s1294_s5 }
 0x18f   : > { %p1063_p5 = pnand %p1062_p4, %p1357_p2 }
 0x190   : > { %p1068_p13 = por %p1067_p12, %p1066_p11 }
 0x191   : > { %p1064_p6 = pneg %p1063_p5 }
 0x192   : > { %p1070_p7 = por %p1069_p3, %p1068_p13 }
 0x194   : > { %p1071_p8 = pnand %p1070_p7, %p1064_p6 }
 0x196   : > { %1074 = shalt.err (!%p1071_p8)
}
 0x197   : > { %877 = dma.vmem_to_hbm [thread:$0]  (%p1357_p2), %s1296_s17, 32, %s1294_s5, %s641_s6  }
 0x198 PF: > { %s666_s30 = sand.u32 1, %s1105_s9   ;;  %p1358_p9 = scmp.ne.s32.totalorder %s1349_s22, 0 }
 0x199   : > { %s667_s4 = scalar_lea.sflag [#allocation4], %s666_s30 }
 0x19a   : > { %p884_p10 = pnand %p737_p0, %p1358_p9 }
 0x19c   : > { %1100 = dma.done.wait (!%p884_p10), %s667_s4, 32  }
 0x19d   : > { %1102 = vsyncadd (!%p884_p10), %s667_s4, 4294967264  ;;  %p16_p1 = scmp.ge.s32.totalorder %s1169_s15, 4   ;;  %s1359_s9 = smov %s1109_s10 }
 0x19e   : > { %s1360_s10 = smov %s1113_s11  ;;  %s1361_s11 = smov %s1181_s18 }
 0x19f   : > { %s1362_s12 = smov %s1169_s15  ;;  %18 = sbr.rel (!%p16_p1) target bundleno = 6 (0x6), region = 82 }
 0x1a6   :  { %672 = vsyncpa [#allocation3], 1 }
 0x1a7   :  { %674 = vsyncpa [#allocation3 + $0x1], 1 }
 0x1a8   :  { %675 = vsyncpa [#allocation6], 1 }
 0x1a9   :  { %676 = vsyncpa [#allocation4], 1 }
 0x1aa   :  { %678 = vsyncpa [#allocation4 + $0x1], 1 }

</bundles_post_ra>
